<compile_context>
chip_gen: v7x
topology: tpu7x:2x2x1
jax: 0.10.0
libtpu: 0.0.40
codegen_flags: <defaults>
</compile_context>

<pallas_src>
import functools

import jax
import jax.numpy as jnp
from jax.experimental import pallas as pl
from jax.experimental.pallas import tpu as pltpu

LANE = 128
NEG_INF = -1e30
_TILE_BUDGET = 40 << 20   # bytes of VMEM the tile choice may consume
_VMEM_LIMIT = 48 << 20    # scoped VMEM limit passed to Mosaic (v7x-safe)


def _round_up(x, m):
    return ((x + m - 1) // m) * m


def _pick_block(n_pad, cap, candidates):
    """Largest candidate <= cap that divides n_pad (n_pad is a mult. of 128)."""
    cap = min(cap, n_pad)
    if n_pad >= 256:
        cap = min(cap, n_pad // 2)   # keep >= 2 row blocks for v7x megacore
    for t in candidates:
        if t <= cap and n_pad % t == 0:
            return t
    return LANE


def _agg_vmem_bytes(tm, tk, n_pad, k_pad):
    a_bytes = 2 * tm * tk * 2          # double-buffered bf16 A tile
    p_bytes = 2 * n_pad * k_pad * 2    # resident bf16 P (count 2 bufs, safe)
    o_bytes = 2 * tm * k_pad * 4       # double-buffered output tile (f32 worst)
    acc_bytes = tm * k_pad * 4         # f32 accumulator
    b_bytes = 2 * k_pad * 4
    return a_bytes + p_bytes + o_bytes + acc_bytes + b_bytes


# ---------------------------------------------------------------------------
# Shared epilogue: bias already added into z (f32); apply activation + store.
# ---------------------------------------------------------------------------
def _epilogue(z, activation, o_ref):
    if activation == "relu":
        o_ref[...] = jnp.maximum(z, 0.0).astype(o_ref.dtype)
    else:
        # log_softmax over lanes; padded classes carry a -1e30 bias so they
        # contribute exp(~-inf)=0 and never win the max.
        m = jnp.max(z, axis=1, keepdims=True)
        s = z - m
        lse = jnp.log(jnp.sum(jnp.exp(s), axis=1, keepdims=True))
        o_ref[...] = (s - lse).astype(o_ref.dtype)


# ---------------------------------------------------------------------------
# Kernel 1: feature-side matmul  P = X @ W  (row-tiled; weights resident)
# ---------------------------------------------------------------------------
def _xw_kernel(x_ref, w_ref, o_ref):
    o_ref[...] = jnp.dot(
        x_ref[...], w_ref[...], preferred_element_type=jnp.float32
    ).astype(o_ref.dtype)


def _feature_matmul(x, w):
    n_pad, cin = x.shape
    k_pad = w.shape[1]
    # Output-write bound: use big row blocks (independent of the agg tm).
    tm = _pick_block(n_pad, cap=2048, candidates=(2048, 1024, 512, 256, 128))
    return pl.pallas_call(
        _xw_kernel,
        out_shape=jax.ShapeDtypeStruct((n_pad, k_pad), jnp.bfloat16),
        grid=(n_pad // tm,),
        in_specs=[
            pl.BlockSpec((tm, cin), lambda i: (i, 0)),
            pl.BlockSpec((cin, k_pad), lambda i: (0, 0)),   # weight resident
        ],
        out_specs=pl.BlockSpec((tm, k_pad), lambda i: (i, 0)),
        compiler_params=pltpu.CompilerParams(
            dimension_semantics=("parallel",),
            vmem_limit_bytes=_VMEM_LIMIT,
        ),
    )(x, w)


# ---------------------------------------------------------------------------
# Kernel 2: aggregation  out = act(A_hat @ P + b)
# ---------------------------------------------------------------------------
def _agg_kernel_single(a_ref, p_ref, b_ref, o_ref, *, activation):
    # Whole reduction in one step: no accumulator, no pl.when bookkeeping.
    z = jnp.dot(a_ref[...], p_ref[...], preferred_element_type=jnp.float32)
    _epilogue(z + b_ref[...], activation, o_ref)


def _agg_kernel_multi(a_ref, p_ref, b_ref, o_ref, acc_ref, *, activation, tk):
    k = pl.program_id(1)

    @pl.when(k == 0)
    def _():
        acc_ref[...] = jnp.zeros_like(acc_ref)

    # P is fully resident in VMEM; slice the k-th row block in-kernel.
    start = pl.multiple_of(k * tk, tk)
    p_blk = p_ref[pl.ds(start, tk), :]
    acc_ref[...] += jnp.dot(a_ref[...], p_blk, preferred_element_type=jnp.float32)

    @pl.when(k == pl.num_programs(1) - 1)
    def _():
        _epilogue(acc_ref[...] + b_ref[...], activation, o_ref)


def _aggregate(a_hat, p, b, *, activation, out_dtype):
    n_pad = a_hat.shape[0]
    k_pad = p.shape[1]
    tm = _pick_block(n_pad, cap=512, candidates=(512, 256, 128))

    # Preferred path: collapse the reduction (tk == n_pad) when it fits VMEM.
    if _agg_vmem_bytes(tm, n_pad, n_pad, k_pad) <= _TILE_BUDGET:
        kernel = functools.partial(_agg_kernel_single, activation=activation)
        return pl.pallas_call(
            kernel,
            out_shape=jax.ShapeDtypeStruct((n_pad, k_pad), out_dtype),
            grid=(n_pad // tm,),
            in_specs=[
                pl.BlockSpec((tm, n_pad), lambda i: (i, 0)),     # A row slab
                pl.BlockSpec((n_pad, k_pad), lambda i: (0, 0)),  # P resident
                pl.BlockSpec((1, k_pad), lambda i: (0, 0)),      # bias resident
            ],
            out_specs=pl.BlockSpec((tm, k_pad), lambda i: (i, 0)),
            compiler_params=pltpu.CompilerParams(
                dimension_semantics=("parallel",),
                vmem_limit_bytes=_VMEM_LIMIT,
            ),
        )(a_hat, p, b)

    # Fallback: (row, k) reduction grid with f32 accumulator; P stays resident.
    tk = LANE
    for t in (8192, 4096, 2048, 1024, 512, 256, 128):
        if n_pad % t == 0 and _agg_vmem_bytes(tm, t, n_pad, k_pad) <= _TILE_BUDGET:
            tk = t
            break
    kernel = functools.partial(_agg_kernel_multi, activation=activation, tk=tk)
    return pl.pallas_call(
        kernel,
        out_shape=jax.ShapeDtypeStruct((n_pad, k_pad), out_dtype),
        grid=(n_pad // tm, n_pad // tk),
        in_specs=[
            pl.BlockSpec((tm, tk), lambda i, k: (i, k)),         # A tile stream
            pl.BlockSpec((n_pad, k_pad), lambda i, k: (0, 0)),   # P resident
            pl.BlockSpec((1, k_pad), lambda i, k: (0, 0)),       # bias resident
        ],
        out_specs=pl.BlockSpec((tm, k_pad), lambda i, k: (i, 0)),
        scratch_shapes=[pltpu.VMEM((tm, k_pad), jnp.float32)],
        compiler_params=pltpu.CompilerParams(
            dimension_semantics=("parallel", "arbitrary"),
            vmem_limit_bytes=_VMEM_LIMIT,
        ),
    )(a_hat, p, b)


# ---------------------------------------------------------------------------
# Full forward pass
# ---------------------------------------------------------------------------
def gnn_model_forward(x, edge_index, w1, b1, w2, b2):
    """x: (N, Cin) f32, edge_index: (2, E) int32 rows (src, dst)."""
    n, cin = x.shape
    hid = w1.shape[1]
    cout = w2.shape[1]

    # Node dim padded only to the lane requirement (not to the tile size).
    n_pad = _round_up(n, LANE)
    h_pad = _round_up(hid, LANE)
    c_pad = _round_up(cout, LANE)

    # ---- glue (plain JAX): padded, symmetric-normalized adjacency, built
    #      directly into the (n_pad, n_pad) buffer (no n x n intermediate) ----
    a_p = jnp.zeros((n_pad, n_pad), jnp.float32)
    a_p = a_p.at[edge_index[1], edge_index[0]].add(1.0)
    diag = jnp.arange(n)
    a_p = a_p.at[diag, diag].add(1.0)                    # self-loops (real nodes)
    deg = jnp.sum(a_p, axis=1)                           # padded rows: deg == 0
    dinv = jnp.where(deg > 0, jax.lax.rsqrt(deg), 0.0)
    a_hat = (dinv[:, None] * a_p * dinv[None, :]).astype(jnp.bfloat16)

    # ---- pad + cast operands (bf16 MXU inputs, f32 biases) ----
    x_p = jnp.zeros((n_pad, cin), jnp.bfloat16).at[:n, :].set(
        x.astype(jnp.bfloat16))
    w1_p = jnp.zeros((cin, h_pad), jnp.bfloat16).at[:, :hid].set(
        w1.astype(jnp.bfloat16))
    b1_p = jnp.zeros((1, h_pad), jnp.float32).at[0, :hid].set(b1)
    w2_p = jnp.zeros((h_pad, c_pad), jnp.bfloat16).at[:hid, :cout].set(
        w2.astype(jnp.bfloat16))
    b2_p = jnp.full((1, c_pad), NEG_INF, jnp.float32).at[0, :cout].set(b2)

    # ---- layer 1: GCNConv(in -> hidden) + ReLU ----
    p1 = _feature_matmul(x_p, w1_p)                                # (Npad, Hpad)
    h = _aggregate(a_hat, p1, b1_p, activation="relu", out_dtype=jnp.bfloat16)

    # ---- layer 2: GCNConv(hidden -> out) + log_softmax ----
    p2 = _feature_matmul(h, w2_p)                                  # (Npad, Cpad)
    z = _aggregate(a_hat, p2, b2_p, activation="log_softmax",
                   out_dtype=jnp.float32)

    return z[:n, :cout]


def reference_forward(x, edge_index, w1, b1, w2, b2):
    n = x.shape[0]
    a = jnp.zeros((n, n), jnp.float32).at[edge_index[1], edge_index[0]].add(1.0)
    a = a + jnp.eye(n, dtype=jnp.float32)
    deg = jnp.sum(a, axis=1)
    dinv = jnp.where(deg > 0, 1.0 / jnp.sqrt(deg), 0.0)
    a_hat = dinv[:, None] * a * dinv[None, :]
    h = jax.nn.relu(a_hat @ (x @ w1) + b1)
    z = a_hat @ (h @ w2) + b2
    return jax.nn.log_softmax(z, axis=1)


if __name__ == "__main__":
    # Small synthetic graph consistent with GNNModel(in_channels, hidden, out).
    N, E = 16, 32
    IN_C, HID_C, OUT_C = 8, 32, 8

    key = jax.random.PRNGKey(0)
    kx, ke1, ke2, kw1, kw2 = jax.random.split(key, 5)

    x = jax.random.normal(kx, (N, IN_C), dtype=jnp.float32)
    src = jax.random.randint(ke1, (E,), 0, N, dtype=jnp.int32)
    dst = jax.random.randint(ke2, (E,), 0, N, dtype=jnp.int32)
    edge_index = jnp.stack([src, dst], axis=0)          # (2, E)

    def glorot(k, shape):
        limit = (6.0 / (shape[0] + shape[1])) ** 0.5
        return jax.random.uniform(k, shape, jnp.float32, -limit, limit)

    w1 = glorot(kw1, (IN_C, HID_C))
    b1 = jnp.zeros((HID_C,), jnp.float32)
    w2 = glorot(kw2, (HID_C, OUT_C))
    b2 = jnp.zeros((OUT_C,), jnp.float32)

    out = gnn_model_forward(x, edge_index, w1, b1, w2, b2)
    out = jax.block_until_ready(out)

    ref = reference_forward(x, edge_index, w1, b1, w2, b2)
    assert out.shape == (N, OUT_C)
    # bf16 operands with f32 accumulation -> looser tolerance than pure f32.
    assert jnp.allclose(out, ref, atol=6e-2, rtol=6e-2), (
        float(jnp.max(jnp.abs(out - ref))))

    print("KERNEL_OK")
</pallas_src>

<mosaic_0001>
module attributes {stable_mosaic.version = 11 : i64} {
  func.func @_xw_kernel(%arg0: i32, %arg1: memref<128x8xbf16, #tpu.memory_space<vmem>>, %arg2: memref<8x128xbf16, #tpu.memory_space<vmem>>, %arg3: memref<128x128xbf16, #tpu.memory_space<vmem>>) attributes {dimension_semantics = [#tpu.dimension_semantics<parallel>], iteration_bounds = array<i64: 1>, scalar_prefetch = 0 : i64, scratch_operands = 0 : i64, tpu.core_type = #tpu.core_type<tc>, window_params = [{transform_indices = @transform_0, window_bounds = array<i64: 128, 8>}, {pipeline_mode = #tpu.pipeline_mode<synchronous>, transform_indices = @transform_1, window_bounds = array<i64: 8, 128>}, {transform_indices = @transform_2, window_bounds = array<i64: 128, 128>}]} {
    %c0 = arith.constant 0 : index
    %c0_0 = arith.constant 0 : index
    %0 = vector.load %arg1[%c0, %c0_0] : memref<128x8xbf16, #tpu.memory_space<vmem>>, vector<128x8xbf16>
    %c0_1 = arith.constant 0 : index
    %c0_2 = arith.constant 0 : index
    %1 = vector.load %arg2[%c0_1, %c0_2] : memref<8x128xbf16, #tpu.memory_space<vmem>>, vector<8x128xbf16>
    %cst = arith.constant dense<0.000000e+00> : vector<128x128xf32>
    %2 = tpu.matmul %0, %1, %cst {dimension_numbers = #tpu.dot_dimension_numbers<[1], [0], [0], [1], [0, 0, 1, 1], [], []>} : vector<128x8xbf16>, vector<8x128xbf16>, vector<128x128xf32> -> vector<128x128xf32>
    %3 = arith.truncf %2 : vector<128x128xf32> to vector<128x128xbf16>
    %c0_3 = arith.constant 0 : index
    %c0_4 = arith.constant 0 : index
    %4 = vector.load %arg3[%c0_3, %c0_4] : memref<128x128xbf16, #tpu.memory_space<vmem>>, vector<128x128xbf16>
    tpu.vector_store %arg3[%c0_3, %c0_4], %3 {strides = array<i32>} : memref<128x128xbf16, #tpu.memory_space<vmem>>, vector<128x128xbf16>,
    return
  }
  func.func @transform_0(%arg0: i32) -> (i32, i32) {
    %c0_i32 = arith.constant 0 : i32
    %c0_i32_0 = arith.constant 0 : i32
    return %arg0, %c0_i32 : i32, i32
  }
  func.func @transform_1(%arg0: i32) -> (i32, i32) {
    %c0_i32 = arith.constant 0 : i32
    %c0_i32_0 = arith.constant 0 : i32
    %c0_i32_1 = arith.constant 0 : i32
    return %c0_i32, %c0_i32_0 : i32, i32
  }
  func.func @transform_2(%arg0: i32) -> (i32, i32) {
    %c0_i32 = arith.constant 0 : i32
    %c0_i32_0 = arith.constant 0 : i32
    return %arg0, %c0_i32 : i32, i32
  }
}

</mosaic_0001>

<bundles_post_ra>
// kernel: tpu_custom_call.1
= control target key start
LH: loop header
LB: loop body
LE: loop exit
PB: predicated region body
PF: predicated region fallthrough
CT: control target
= control target key end

     0   :  { %vm95_vm0 = vcmask 1043456   ;;  %vm70_vm1 = vcmask 64512   ;;  %s518_s0 = inlined_call_operand.vmem [shape: bf16[128,8], index: 0, kind: input, shape index: {}]   ;;  %s519_s1 = inlined_call_operand.vmem [shape: bf16[8,128], index: 1, kind: input, shape index: {}]   ;;  %s520_s2 = inlined_call_operand.hbm [shape: bf16[128,128], index: 2, kind: output, shape index: {}]  }
   0x1   :  { %v29_v0 = vld [vmem:[%s519_s1] sm:$0xf]  ;;  %v423_v4 = vld [vmem:[%s518_s0 + $0x8] sm:$0xff]   ;;  %v425_v6 = vld [vmem:[%s518_s0 + $0x10] sm:$0xff]  }
   0x2   :  { %v421_v1 = vld [vmem:[%s518_s0] sm:$0xff]   ;;  %416 = vmatprep.subr.msk.bf16.mxu0 %vm95_vm0, %v29_v0  ;;  %417 = vmatprep.subr.msk.bf16.mxu1 %vm95_vm0, %v29_v0  ;;  %v97_v2 = vsel %vm95_vm0, %v29_v0, 0  ;;  %v424_v5 = vld [vmem:[%s518_s0 + $0x28] sm:$0xff]   ;;  %v426_v7 = vld [vmem:[%s518_s0 + $0x30] sm:$0xff]  }
   0x3   :  { %397 = vmatpush3.bf16.msra.mxu0 %v97_v2  ;;  %415 = vmatpush3.bf16.msra.mxu1 %v97_v2  ;;  %v422_v3 = vld [vmem:[%s518_s0 + $0x20] sm:$0xff]  }
   0x4   :  { %398 = vmatprep.mubr.msk.bf16.mxu0 %vm70_vm1, %v421_v1  ;;  %406 = vmatprep.mubr.msk.bf16.mxu1 %vm70_vm1, %v422_v3 }
   0x6   :  { %399 = vmatmul.mubr.msk.bf16.vlgmr.msra.gmra.mrb[0].mxu0 %vm70_vm1, %v423_v4  ;;  %407 = vmatmul.mubr.msk.bf16.vlgmr.msra.gmra.mrb[0].mxu1 %vm70_vm1, %v424_v5 }
   0x7   :  { %402 = vmatprep.mubr.msk.bf16.mxu0 %vm70_vm1, %v425_v6  ;;  %410 = vmatprep.mubr.msk.bf16.mxu1 %vm70_vm1, %v426_v7 }
   0x8   :  { %7 = vsyncpa [#allocation3], 0  ;;  %v427_v8 = vld [vmem:[%s518_s0 + $0x18] sm:$0xff]  }
   0x9   :  { %v428_v9 = vld [vmem:[%s518_s0 + $0x38] sm:$0xff]   ;;  %s453_s0 = smov [#allocation2]  }
   0xa   :  { %s281_s26 = sshll.u32 %s453_s0, 4  ;;  %s282_s26 = int_to_ptr.vmem [resolvable:$true] %s281_s26 }
   0xb   :  { %s429_s27 = scalar_lea.vmem %s282_s26, 1024  ;;  %p434_p1 = scmp.lt.s32.totalorder %s282_s26, %s282_s26 }
   0xc   :  { %p430_p0 = scmp.ne.s32.totalorder %s282_s26, %s429_s27  ;;  %p435_p2 = scmp.lt.s32.totalorder %s429_s27, %s429_s27 }
   0xe   :  { %403 = vmatmul.mubr.msk.bf16.gmra.mrb[4].mxu0 %vm70_vm1, %v427_v8  ;;  %411 = vmatmul.mubr.msk.bf16.gmra.mrb[4].mxu1 %vm70_vm1, %v428_v9  ;;  %p436_p3 = por %p435_p2, %p434_p1 }
  0x10   :  { %p437_p4 = pnand %p436_p3, %p430_p0 }
  0xd9   :  { %v400_v10 = vpop.f32.mrb[0].mxu0  ;;  %v408_v11 = vpop.f32.mrb[0].mxu1 }
  0xda   :  { %v133_v12 = vpop.f32.mrb[1].mxu0  ;;  %v165_v13 = vpop.f32.mrb[1].mxu1 }
  0xdb   :  { %v401_v14 = vpop.f32.mrb[2].mxu0  ;;  %v409_v16 = vpop.f32.mrb[2].mxu1 }
  0xdc   :  { %v348_v15 = vpack.c.bf16 %v401_v14, %v400_v10  ;;  %v136_v17 = vpop.f32.mrb[3].mxu0  ;;  %v368_v18 = vpack.c.bf16 %v409_v16, %v408_v11  ;;  %v168_v20 = vpop.f32.mrb[3].mxu1 }
  0xdd   :  { %v343_v19 = vpack.c.bf16 %v136_v17, %v133_v12  ;;  %v363_v21 = vpack.c.bf16 %v168_v20, %v165_v13 }
  0xde   :  { %380 = vst [vmem:[#allocation2 + $0x8] sm:$0xff] %v348_v15   ;;  %384 = vst [vmem:[#allocation2 + $0x28] sm:$0xff] %v368_v18  }
  0xdf   :  { %344 = vst [vmem:[#allocation2] sm:$0xff] %v343_v19   ;;  %383 = vst [vmem:[#allocation2 + $0x20] sm:$0xff] %v363_v21  }
  0xe1   :  { %v404_v22 = vpop.f32.mrb[4].mxu0  ;;  %v412_v23 = vpop.f32.mrb[4].mxu1 }
  0xe2   :  { %v149_v24 = vpop.f32.mrb[5].mxu0  ;;  %v181_v25 = vpop.f32.mrb[5].mxu1 }
  0xe3   :  { %v405_v26 = vpop.f32.mrb[6].mxu0  ;;  %v413_v28 = vpop.f32.mrb[6].mxu1 }
  0xe4   :  { %v358_v27 = vpack.c.bf16 %v405_v26, %v404_v22  ;;  %v152_v29 = vpop.f32.mrb[7].mxu0  ;;  %v378_v30 = vpack.c.bf16 %v413_v28, %v412_v23  ;;  %v184_v32 = vpop.f32.mrb[7].mxu1 }
  0xe5   :  { %v353_v31 = vpack.c.bf16 %v152_v29, %v149_v24  ;;  %v373_v33 = vpack.c.bf16 %v184_v32, %v181_v25 }
  0xe6   :  { %382 = vst [vmem:[#allocation2 + $0x18] sm:$0xff] %v358_v27   ;;  %386 = vst [vmem:[#allocation2 + $0x38] sm:$0xff] %v378_v30  }
  0xe7   :  { %381 = vst [vmem:[#allocation2 + $0x10] sm:$0xff] %v353_v31   ;;  %385 = vst [vmem:[#allocation2 + $0x30] sm:$0xff] %v373_v33  }
  0xe8   :  { %440 = shalt.err (!%p437_p4)
}
  0xe9   :  { %s441_s30 = scalar_lea.hbm %s520_s2, 1024 }
  0xea   :  { %p442_p5 = scmp.ne.s32.totalorder %s520_s2, %s441_s30  ;;  %p445_p6 = scmp.lt.u32.totalorder %s441_s30, %s520_s2 }
  0xec   :  { %p447_p7 = pnand %p445_p6, %p442_p5 }
  0xee   :  { %450 = shalt.err (!%p447_p7)
}
  0xef   :  { %s454_s7 = smov 64   ;;  %s455_s8 = smov 4  }
  0xf0   :  { %287 = dma.vmem_to_hbm [thread:$0]  %s282_s26, 1024, %s520_s2, [#allocation3], %s454_s7, %s454_s7, %s455_s8  }
  0xf1   :  { %451 = dma.done.wait [#allocation3], 1024  }
  0xf2   :  { %452 = vsyncadd [#allocation3], 4294966272 }
  0xf3   :  { %291 = vsyncpa [#allocation3], 1 }

</bundles_post_ra>
